<compile_context>
chip_gen: v6e
topology: v6e:2x2x1
jax: 0.10.0
libtpu: 0.0.40
codegen_flags: <defaults>
</compile_context>

<pallas_src>
import functools

import jax
import jax.numpy as jnp
from jax import lax
from jax.experimental import pallas as pl
from jax.experimental.pallas import tpu as pltpu

LANES = 128          # lane width (fast axis)
TROWS_MAX = 1024     # max rows per grid step: 1024 x 128 x 4 B = 512 KiB per f32 tile
NCHUNKS = 2          # leading "parallel" grid axis; sharded across TensorCores on v7x


def _round_up(x, m):
    return -(-x // m) * m


def _sublane_multiple(dtype):
    # Native second-minor tile multiple for this dtype: f32 -> 8, bf16 -> 16, int8 -> 32.
    return max(8, 32 // jnp.dtype(dtype).itemsize)


def _make_kernel(n, trows, sub, inner):
    """Build the per-shape kernel. All arguments are static Python ints."""
    block_elems = trows * LANES
    n_full = n // block_elems          # logical blocks containing only valid elements
    nsub = trows // sub                # (sub, 128) sub-tiles per block
    unroll = min(8, nsub)

    def kernel(yp_ref, yt_ref, out_ref, acc_ref):
        c = pl.program_id(0)           # chunk id (parallel across cores on v7x)
        i = pl.program_id(1)           # block within the chunk (reduction axis)
        logical = c * inner + i        # logical row-block index (may overshoot)

        @pl.when(i == 0)
        def _init():
            acc_ref[...] = jnp.zeros_like(acc_ref)

        def run(masked):
            # Stream the (trows, 128) block as (sub, 128) sub-tiles through a fori_loop
            # with vreg-resident carries: each input vreg is loaded exactly once, no
            # (trows, 128) temporaries, no per-sub-tile accumulator stores.
            if masked:
                base = (lax.broadcasted_iota(jnp.int32, (sub, LANES), 0) * LANES
                        + lax.broadcasted_iota(jnp.int32, (sub, LANES), 1)
                        + logical * block_elems)

            def body(r, accs):
                s_pos, s_yp, s_yppos, s_yp2, s_yp2pos = accs
                r0 = pl.multiple_of(r * sub, sub)
                yp = yp_ref[pl.ds(r0, sub), :].astype(jnp.float32)
                # TODO(synk): binary labels assumed (standard for AUC training); labels
                # not in {0, 1} count as negatives here, whereas torch drops them from
                # both masks (exact 6-sum variant would cost ~4 extra VALU ops/element).
                pos = (yt_ref[pl.ds(r0, sub), :] == 1).astype(jnp.float32)
                if masked:
                    valid = (base + r0 * LANES) < n
                    # select (not multiply): out-of-range rows may hold NaN garbage.
                    yp = jnp.where(valid, yp, 0.0)
                    pos = jnp.where(valid, pos, 0.0)
                yppos = yp * pos
                return (s_pos + pos,
                        s_yp + yp,
                        s_yppos + yppos,
                        s_yp2 + yp * yp,
                        s_yp2pos + yppos * yp)

            z = jnp.zeros((sub, LANES), jnp.float32)
            accs = lax.fori_loop(0, nsub, body, (z, z, z, z, z), unroll=unroll)
            for k in range(5):
                acc_ref[k] += accs[k]

        @pl.when(logical < n_full)
        def _interior():                 # fully-valid block: no masking
            run(masked=False)

        @pl.when(logical >= n_full)
        def _tail():                     # ragged / clamped out-of-range block
            run(masked=True)

        @pl.when(i == inner - 1)
        def _finalize():                 # in-kernel sublane reduce (XLU), once per chunk
            for k in range(5):
                out_ref[0, k:k + 1, :] = jnp.sum(acc_ref[k], axis=0, keepdims=True)

    return kernel


@functools.partial(jax.jit, static_argnames=("margin",))
def aucm_loss(y_pred, y_true, a, b, alpha, margin=1.0):
    """Pallas implementation of AUCMLoss.forward (imratio computed from the labels)."""
    yp = jnp.reshape(y_pred, (-1,))
    yt = jnp.reshape(y_true, (-1,))
    n = yp.shape[0]

    # Sub-tile row granularity: native sublane multiple of the most constrained input
    # dtype.  Labels are streamed in their given dtype (no standalone upcast pass).
    sub = max(_sublane_multiple(yp.dtype), _sublane_multiple(yt.dtype))
    tile_elems = sub * LANES

    # Pad only what the (sublane, lane) layout strictly requires:
    #   * tiny inputs (< one tile): pad to exactly one (sub, 128) tile;
    #   * otherwise: lane alignment only (zero-copy reshape when n % 128 == 0).
    # Padded / out-of-range elements are masked in-kernel, so the pad value is moot.
    if n < tile_elems:
        rem = tile_elems - n
    elif n % LANES:
        rem = LANES - n % LANES
    else:
        rem = 0
    if rem:
        yp = jnp.pad(yp, (0, rem))
        yt = jnp.pad(yt, (0, rem))
    rows = (n + rem) // LANES
    yp = yp.reshape(rows, LANES)
    yt = yt.reshape(rows, LANES)

    # Tile / chunk selection: pick the largest trows (multiple of `sub`, <= TROWS_MAX)
    # such that nblk = cdiv(rows, trows) is an exact multiple of nchunks -> no clamped
    # dummy tiles, balanced 2-TC split on v7x.  Tiny inputs use a single chunk.
    if rows <= sub:
        nchunks, trows, nblk = 1, sub, 1
    else:
        nchunks = NCHUNKS
        t_max = min(TROWS_MAX, _round_up(pl.cdiv(rows, nchunks), sub))
        trows = nblk = None
        t = t_max
        while t >= sub:
            if pl.cdiv(rows, t) % nchunks == 0:
                trows, nblk = t, pl.cdiv(rows, t)
                break
            t -= sub
        if trows is None:        # fallback; clamp + in-kernel masking keep it correct
            trows, nblk = t_max, pl.cdiv(rows, t_max)
    inner = pl.cdiv(nblk, nchunks)

    def idx_map(c, i):
        # No-op when nblk % nchunks == 0 (the normal case); otherwise an out-of-range
        # logical block re-reads the last real block and is fully masked in-kernel.
        return (jnp.minimum(c * inner + i, nblk - 1), 0)

    partials = pl.pallas_call(
        _make_kernel(n, trows, sub, inner),
        out_shape=jax.ShapeDtypeStruct((nchunks, 5, LANES), jnp.float32),
        grid_spec=pltpu.PrefetchScalarGridSpec(
            num_scalar_prefetch=0,
            grid=(nchunks, inner),
            in_specs=[
                pl.BlockSpec((trows, LANES), idx_map),   # y_pred tiles
                pl.BlockSpec((trows, LANES), idx_map),   # y_true tiles (native dtype)
            ],
            out_specs=pl.BlockSpec((1, 5, LANES), lambda c, i: (c, 0, 0)),
            scratch_shapes=[pltpu.VMEM((5, sub, LANES), jnp.float32)],
        ),
        compiler_params=pltpu.CompilerParams(
            dimension_semantics=("parallel", "arbitrary"),
        ),
    )(yp, yt)

    # Tiny epilogue (fused by XLA with the scalar formula): combine the per-chunk lane
    # partials and re-introduce a / b algebraically:
    #   mean((y-a)^2 * pos) = (S_yp2_pos - 2a*S_yp_pos + a^2*N_pos) / N
    #   mean((y-b)^2 * neg) = (S_yp2_neg - 2b*S_yp_neg + b^2*N_neg) / N
    sums = jnp.sum(partials, axis=(0, 2))
    n_pos, s_yp, s_yp_pos, s_yp2, s_yp2_pos = (sums[k] for k in range(5))

    a_s = jnp.asarray(a, jnp.float32).reshape(())
    b_s = jnp.asarray(b, jnp.float32).reshape(())
    alpha_s = jnp.asarray(alpha, jnp.float32).reshape(())
    nf = jnp.float32(n)      # exact for n < 2**24, matching torch's f32 arithmetic

    s_yp_neg = s_yp - s_yp_pos
    s_yp2_neg = s_yp2 - s_yp2_pos
    n_neg = nf - n_pos
    p = n_pos / nf

    mean_a = (s_yp2_pos - 2.0 * a_s * s_yp_pos + a_s * a_s * n_pos) / nf
    mean_b = (s_yp2_neg - 2.0 * b_s * s_yp_neg + b_s * b_s * n_neg) / nf
    mean_c = (p * s_yp_neg - (1.0 - p) * s_yp_pos) / nf

    loss = ((1.0 - p) * mean_a
            + p * mean_b
            + 2.0 * alpha_s * (p * (1.0 - p) * margin + mean_c)
            - p * (1.0 - p) * alpha_s ** 2)
    return jnp.reshape(loss, (1,))       # matches torch's (1,)-shaped result


def aucm_loss_ref(y_pred, y_true, a, b, alpha, margin=1.0):
    """Pure-JAX reference mirroring the torch forward exactly."""
    y_pred = jnp.reshape(y_pred, (-1, 1)).astype(jnp.float32)
    y_true = jnp.reshape(y_true, (-1, 1)).astype(jnp.float32)
    p = jnp.sum((y_true == 1).astype(jnp.float32)) / y_true.shape[0]
    pos = (y_true == 1).astype(jnp.float32)
    neg = (y_true == 0).astype(jnp.float32)
    loss = (
        (1 - p) * jnp.mean((y_pred - a) ** 2 * pos)
        + p * jnp.mean((y_pred - b) ** 2 * neg)
        + 2 * alpha * (p * (1 - p) * margin
                       + jnp.mean(p * y_pred * neg - (1 - p) * y_pred * pos))
        - p * (1 - p) * alpha ** 2
    )
    return jnp.reshape(loss, (1,))


if __name__ == "__main__":
    key = jax.random.PRNGKey(0)

    def make_inputs(k, n, imratio=0.3, label_dtype=jnp.float32):
        kp, kl = jax.random.split(k)
        y_pred = jax.nn.sigmoid(jax.random.normal(kp, (n, 1), dtype=jnp.float32))
        y_true = (jax.random.uniform(kl, (n, 1)) < imratio).astype(label_dtype)
        return y_pred, y_true

    # Module __init__ parameters: a = b = alpha = zeros(1), margin = 1.0, plus a second
    # non-trivial setting so the a / b / alpha terms are exercised.
    a0 = jnp.zeros((1,), jnp.float32)
    b0 = jnp.zeros((1,), jnp.float32)
    alpha0 = jnp.zeros((1,), jnp.float32)
    a1 = jnp.full((1,), 0.25, jnp.float32)
    b1 = jnp.full((1,), -0.10, jnp.float32)
    alpha1 = jnp.full((1,), 0.50, jnp.float32)
    margin = 1.0

    k1, k2, k3, k4 = jax.random.split(key, 4)

    # 1) Small ragged batch (N=300): single-tile single-chunk path with tail masking.
    yp_s, yt_s = make_inputs(k1, 300)
    for (pa, pb, pal) in [(a0, b0, alpha0), (a1, b1, alpha1)]:
        out = aucm_loss(yp_s, yt_s, pa, pb, pal, margin=margin)
        jax.block_until_ready(out)
        ref = aucm_loss_ref(yp_s, yt_s, pa, pb, pal, margin=margin)
        assert jnp.allclose(out, ref, rtol=1e-4, atol=1e-6), (out, ref)

    # 2) Multi-block ragged batch (N=200000): both chunks active, unmasked interior
    #    fast path plus one masked tail block.
    yp_m, yt_m = make_inputs(k2, 200_000)
    out = aucm_loss(yp_m, yt_m, a1, b1, alpha1, margin=margin)
    jax.block_until_ready(out)
    ref = aucm_loss_ref(yp_m, yt_m, a1, b1, alpha1, margin=margin)
    assert jnp.allclose(out, ref, rtol=1e-4, atol=1e-5), (out, ref)

    # 3) Exactly block-aligned batch (N = 2*1024*128): zero-pad-copy path, every block
    #    on the unmasked fast path, one 1024-row block per chunk.
    yp_l, yt_l = make_inputs(k3, 2 * TROWS_MAX * LANES)
    out = aucm_loss(yp_l, yt_l, a1, b1, alpha1, margin=margin)
    jax.block_until_ready(out)
    ref = aucm_loss_ref(yp_l, yt_l, a1, b1, alpha1, margin=margin)
    assert jnp.allclose(out, ref, rtol=1e-4, atol=1e-5), (out, ref)

    # 4) bf16 labels (N=5000): narrow label stream (fewer HBM bytes on v5e/v6e),
    #    16-row sub-tiles, ragged masked tail.
    yp_b, yt_b = make_inputs(k4, 5000, label_dtype=jnp.bfloat16)
    out = aucm_loss(yp_b, yt_b, a1, b1, alpha1, margin=margin)
    jax.block_until_ready(out)
    ref = aucm_loss_ref(yp_b, yt_b.astype(jnp.float32), a1, b1, alpha1, margin=margin)
    assert jnp.allclose(out, ref, rtol=1e-4, atol=1e-5), (out, ref)

    print("KERNEL_OK")
</pallas_src>

<mosaic_0001>
module attributes {stable_mosaic.version = 11 : i64} {
  func.func @kernel(%arg0: i32, %arg1: i32, %arg2: memref<8x128xf32, #tpu.memory_space<vmem>>, %arg3: memref<8x128xf32, #tpu.memory_space<vmem>>, %arg4: memref<1x5x128xf32, #tpu.memory_space<vmem>>, %arg5: memref<5x8x128xf32, #tpu.memory_space<vmem>>) attributes {dimension_semantics = [#tpu.dimension_semantics<parallel>, #tpu.dimension_semantics<arbitrary>], iteration_bounds = array<i64: 1, 1>, scalar_prefetch = 0 : i64, scratch_operands = 1 : i64, tpu.core_type = #tpu.core_type<tc>, window_params = [{transform_indices = @transform_0, window_bounds = array<i64: 8, 128>}, {transform_indices = @transform_1, window_bounds = array<i64: 8, 128>}, {transform_indices = @transform_2, window_bounds = array<i64: 1, 5, 128>}]} {
    %c1_i32 = arith.constant 1 : i32
    %0 = arith.muli %arg0, %c1_i32 : i32
    %1 = arith.addi %0, %arg1 : i32
    %c0_i32 = arith.constant 0 : i32
    %2 = arith.cmpi eq, %arg1, %c0_i32 : i32
    %3 = arith.extui %2 : i1 to i32
    %c0_i32_0 = arith.constant 0 : i32
    %4 = arith.cmpi ne, %3, %c0_i32_0 : i32
    scf.if %4 {
      %cst = arith.constant 0.000000e+00 : f32
      %14 = vector.broadcast %cst : f32 to vector<5x8x128xf32>
      %c0 = arith.constant 0 : index
      %c0_7 = arith.constant 0 : index
      %c0_8 = arith.constant 0 : index
      %15 = vector.load %arg5[%c0, %c0_7, %c0_8] : memref<5x8x128xf32, #tpu.memory_space<vmem>>, vector<5x8x128xf32>
      tpu.vector_store %arg5[%c0, %c0_7, %c0_8], %14 {strides = array<i32>} : memref<5x8x128xf32, #tpu.memory_space<vmem>>, vector<5x8x128xf32>,
    } else {
    }
    %c0_i32_1 = arith.constant 0 : i32
    %5 = arith.cmpi slt, %1, %c0_i32_1 : i32
    %6 = arith.extui %5 : i1 to i32
    %c0_i32_2 = arith.constant 0 : i32
    %7 = arith.cmpi ne, %6, %c0_i32_2 : i32
    scf.if %7 {
      %cst = arith.constant 0.000000e+00 : f32
      %14 = vector.broadcast %cst : f32 to vector<8x128xf32>
      %c0_i32_7 = arith.constant 0 : i32
      %c8_i32 = arith.constant 8 : i32
      %15 = arith.muli %c0_i32_7, %c8_i32 : i32
      %16 = tpu.assume_multiple %15, 8 : i32
      %17 = arith.index_cast %16 : i32 to index
      %c0 = arith.constant 0 : index
      %18 = vector.load %arg2[%17, %c0] : memref<8x128xf32, #tpu.memory_space<vmem>>, vector<8x128xf32>
      %19 = arith.index_cast %16 : i32 to index
      %c0_8 = arith.constant 0 : index
      %20 = vector.load %arg3[%19, %c0_8] : memref<8x128xf32, #tpu.memory_space<vmem>>, vector<8x128xf32>
      %cst_9 = arith.constant 1.000000e+00 : f32
      %21 = vector.broadcast %cst_9 : f32 to vector<8x128xf32>
      %22 = arith.cmpf oeq, %20, %21 : vector<8x128xf32>
      %23 = arith.extui %22 : vector<8x128xi1> to vector<8x128xi32>
      %24 = arith.sitofp %23 : vector<8x128xi32> to vector<8x128xf32>
      %25 = arith.mulf %18, %24 : vector<8x128xf32>
      %26 = arith.addf %14, %24 : vector<8x128xf32>
      %27 = arith.addf %14, %18 : vector<8x128xf32>
      %28 = arith.addf %14, %25 : vector<8x128xf32>
      %29 = arith.mulf %18, %18 : vector<8x128xf32>
      %30 = arith.addf %14, %29 : vector<8x128xf32>
      %31 = arith.mulf %25, %18 : vector<8x128xf32>
      %32 = arith.addf %14, %31 : vector<8x128xf32>
      %c1_i32_10 = arith.constant 1 : i32
      %c0_11 = arith.constant 0 : index
      %c0_12 = arith.constant 0 : index
      %c0_13 = arith.constant 0 : index
      %33 = vector.load %arg5[%c0_11, %c0_12, %c0_13] : memref<5x8x128xf32, #tpu.memory_space<vmem>>, vector<1x8x128xf32>
      %34 = vector.shape_cast %33 : vector<1x8x128xf32> to vector<8x128xf32>
      %35 = arith.addf %34, %26 : vector<8x128xf32>
      %c0_14 = arith.constant 0 : index
      %c0_15 = arith.constant 0 : index
      %c0_16 = arith.constant 0 : index
      %36 = vector.load %arg5[%c0_14, %c0_15, %c0_16] : memref<5x8x128xf32, #tpu.memory_space<vmem>>, vector<1x8x128xf32>
      %37 = vector.shape_cast %36 : vector<1x8x128xf32> to vector<8x128xf32>
      %38 = vector.shape_cast %35 : vector<8x128xf32> to vector<1x8x128xf32>
      tpu.vector_store %arg5[%c0_14, %c0_15, %c0_16], %38 {strides = array<i32>} : memref<5x8x128xf32, #tpu.memory_space<vmem>>, vector<1x8x128xf32>,
      %c1 = arith.constant 1 : index
      %c0_17 = arith.constant 0 : index
      %c0_18 = arith.constant 0 : index
      %39 = vector.load %arg5[%c1, %c0_17, %c0_18] : memref<5x8x128xf32, #tpu.memory_space<vmem>>, vector<1x8x128xf32>
      %40 = vector.shape_cast %39 : vector<1x8x128xf32> to vector<8x128xf32>
      %41 = arith.addf %40, %27 : vector<8x128xf32>
      %c1_19 = arith.constant 1 : index
      %c0_20 = arith.constant 0 : index
      %c0_21 = arith.constant 0 : index
      %42 = vector.load %arg5[%c1_19, %c0_20, %c0_21] : memref<5x8x128xf32, #tpu.memory_space<vmem>>, vector<1x8x128xf32>
      %43 = vector.shape_cast %42 : vector<1x8x128xf32> to vector<8x128xf32>
      %44 = vector.shape_cast %41 : vector<8x128xf32> to vector<1x8x128xf32>
      tpu.vector_store %arg5[%c1_19, %c0_20, %c0_21], %44 {strides = array<i32>} : memref<5x8x128xf32, #tpu.memory_space<vmem>>, vector<1x8x128xf32>,
      %c2 = arith.constant 2 : index
      %c0_22 = arith.constant 0 : index
      %c0_23 = arith.constant 0 : index
      %45 = vector.load %arg5[%c2, %c0_22, %c0_23] : memref<5x8x128xf32, #tpu.memory_space<vmem>>, vector<1x8x128xf32>
      %46 = vector.shape_cast %45 : vector<1x8x128xf32> to vector<8x128xf32>
      %47 = arith.addf %46, %28 : vector<8x128xf32>
      %c2_24 = arith.constant 2 : index
      %c0_25 = arith.constant 0 : index
      %c0_26 = arith.constant 0 : index
      %48 = vector.load %arg5[%c2_24, %c0_25, %c0_26] : memref<5x8x128xf32, #tpu.memory_space<vmem>>, vector<1x8x128xf32>
      %49 = vector.shape_cast %48 : vector<1x8x128xf32> to vector<8x128xf32>
      %50 = vector.shape_cast %47 : vector<8x128xf32> to vector<1x8x128xf32>
      tpu.vector_store %arg5[%c2_24, %c0_25, %c0_26], %50 {strides = array<i32>} : memref<5x8x128xf32, #tpu.memory_space<vmem>>, vector<1x8x128xf32>,
      %c3 = arith.constant 3 : index
      %c0_27 = arith.constant 0 : index
      %c0_28 = arith.constant 0 : index
      %51 = vector.load %arg5[%c3, %c0_27, %c0_28] : memref<5x8x128xf32, #tpu.memory_space<vmem>>, vector<1x8x128xf32>
      %52 = vector.shape_cast %51 : vector<1x8x128xf32> to vector<8x128xf32>
      %53 = arith.addf %52, %30 : vector<8x128xf32>
      %c3_29 = arith.constant 3 : index
      %c0_30 = arith.constant 0 : index
      %c0_31 = arith.constant 0 : index
      %54 = vector.load %arg5[%c3_29, %c0_30, %c0_31] : memref<5x8x128xf32, #tpu.memory_space<vmem>>, vector<1x8x128xf32>
      %55 = vector.shape_cast %54 : vector<1x8x128xf32> to vector<8x128xf32>
      %56 = vector.shape_cast %53 : vector<8x128xf32> to vector<1x8x128xf32>
      tpu.vector_store %arg5[%c3_29, %c0_30, %c0_31], %56 {strides = array<i32>} : memref<5x8x128xf32, #tpu.memory_space<vmem>>, vector<1x8x128xf32>,
      %c4 = arith.constant 4 : index
      %c0_32 = arith.constant 0 : index
      %c0_33 = arith.constant 0 : index
      %57 = vector.load %arg5[%c4, %c0_32, %c0_33] : memref<5x8x128xf32, #tpu.memory_space<vmem>>, vector<1x8x128xf32>
      %58 = vector.shape_cast %57 : vector<1x8x128xf32> to vector<8x128xf32>
      %59 = arith.addf %58, %32 : vector<8x128xf32>
      %c4_34 = arith.constant 4 : index
      %c0_35 = arith.constant 0 : index
      %c0_36 = arith.constant 0 : index
      %60 = vector.load %arg5[%c4_34, %c0_35, %c0_36] : memref<5x8x128xf32, #tpu.memory_space<vmem>>, vector<1x8x128xf32>
      %61 = vector.shape_cast %60 : vector<1x8x128xf32> to vector<8x128xf32>
      %62 = vector.shape_cast %59 : vector<8x128xf32> to vector<1x8x128xf32>
      tpu.vector_store %arg5[%c4_34, %c0_35, %c0_36], %62 {strides = array<i32>} : memref<5x8x128xf32, #tpu.memory_space<vmem>>, vector<1x8x128xf32>,
    } else {
    }
    %c0_i32_3 = arith.constant 0 : i32
    %8 = arith.cmpi sge, %1, %c0_i32_3 : i32
    %9 = arith.extui %8 : i1 to i32
    %c0_i32_4 = arith.constant 0 : i32
    %10 = arith.cmpi ne, %9, %c0_i32_4 : i32
    scf.if %10 {
      %14 = tpu.iota {dimensions = array<i32: 0>} : vector<8x128xi32>
      %c128_i32 = arith.constant 128 : i32
      %15 = vector.broadcast %c128_i32 : i32 to vector<8x128xi32>
      %16 = arith.muli %14, %15 : vector<8x128xi32>
      %17 = tpu.iota {dimensions = array<i32: 1>} : vector<8x128xi32>
      %18 = arith.addi %16, %17 : vector<8x128xi32>
      %c1024_i32 = arith.constant 1024 : i32
      %19 = arith.muli %1, %c1024_i32 : i32
      %20 = vector.broadcast %19 : i32 to vector<8x128xi32>
      %21 = arith.addi %18, %20 : vector<8x128xi32>
      %cst = arith.constant 0.000000e+00 : f32
      %22 = vector.broadcast %cst : f32 to vector<8x128xf32>
      %c0_i32_7 = arith.constant 0 : i32
      %c8_i32 = arith.constant 8 : i32
      %23 = arith.muli %c0_i32_7, %c8_i32 : i32
      %24 = tpu.assume_multiple %23, 8 : i32
      %25 = arith.index_cast %24 : i32 to index
      %c0 = arith.constant 0 : index
      %26 = vector.load %arg2[%25, %c0] : memref<8x128xf32, #tpu.memory_space<vmem>>, vector<8x128xf32>
      %27 = arith.index_cast %24 : i32 to index
      %c0_8 = arith.constant 0 : index
      %28 = vector.load %arg3[%27, %c0_8] : memref<8x128xf32, #tpu.memory_space<vmem>>, vector<8x128xf32>
      %cst_9 = arith.constant 1.000000e+00 : f32
      %29 = vector.broadcast %cst_9 : f32 to vector<8x128xf32>
      %30 = arith.cmpf oeq, %28, %29 : vector<8x128xf32>
      %31 = arith.extui %30 : vector<8x128xi1> to vector<8x128xi32>
      %32 = arith.sitofp %31 : vector<8x128xi32> to vector<8x128xf32>
      %c128_i32_10 = arith.constant 128 : i32
      %33 = arith.muli %24, %c128_i32_10 : i32
      %34 = vector.broadcast %33 : i32 to vector<8x128xi32>
      %35 = arith.addi %21, %34 : vector<8x128xi32>
      %c300_i32 = arith.constant 300 : i32
      %36 = vector.broadcast %c300_i32 : i32 to vector<8x128xi32>
      %37 = arith.cmpi slt, %35, %36 : vector<8x128xi32>
      %cst_11 = arith.constant 0.000000e+00 : f32
      %38 = vector.broadcast %cst_11 : f32 to vector<8x128xf32>
      %39 = arith.select %37, %26, %38 : vector<8x128xi1>, vector<8x128xf32>
      %cst_12 = arith.constant 0.000000e+00 : f32
      %40 = vector.broadcast %cst_12 : f32 to vector<8x128xf32>
      %41 = arith.select %37, %32, %40 : vector<8x128xi1>, vector<8x128xf32>
      %42 = arith.mulf %39, %41 : vector<8x128xf32>
      %43 = arith.addf %22, %41 : vector<8x128xf32>
      %44 = arith.addf %22, %39 : vector<8x128xf32>
      %45 = arith.addf %22, %42 : vector<8x128xf32>
      %46 = arith.mulf %39, %39 : vector<8x128xf32>
      %47 = arith.addf %22, %46 : vector<8x128xf32>
      %48 = arith.mulf %42, %39 : vector<8x128xf32>
      %49 = arith.addf %22, %48 : vector<8x128xf32>
      %c1_i32_13 = arith.constant 1 : i32
      %c0_14 = arith.constant 0 : index
      %c0_15 = arith.constant 0 : index
      %c0_16 = arith.constant 0 : index
      %50 = vector.load %arg5[%c0_14, %c0_15, %c0_16] : memref<5x8x128xf32, #tpu.memory_space<vmem>>, vector<1x8x128xf32>
      %51 = vector.shape_cast %50 : vector<1x8x128xf32> to vector<8x128xf32>
      %52 = arith.addf %51, %43 : vector<8x128xf32>
      %c0_17 = arith.constant 0 : index
      %c0_18 = arith.constant 0 : index
      %c0_19 = arith.constant 0 : index
      %53 = vector.load %arg5[%c0_17, %c0_18, %c0_19] : memref<5x8x128xf32, #tpu.memory_space<vmem>>, vector<1x8x128xf32>
      %54 = vector.shape_cast %53 : vector<1x8x128xf32> to vector<8x128xf32>
      %55 = vector.shape_cast %52 : vector<8x128xf32> to vector<1x8x128xf32>
      tpu.vector_store %arg5[%c0_17, %c0_18, %c0_19], %55 {strides = array<i32>} : memref<5x8x128xf32, #tpu.memory_space<vmem>>, vector<1x8x128xf32>,
      %c1 = arith.constant 1 : index
      %c0_20 = arith.constant 0 : index
      %c0_21 = arith.constant 0 : index
      %56 = vector.load %arg5[%c1, %c0_20, %c0_21] : memref<5x8x128xf32, #tpu.memory_space<vmem>>, vector<1x8x128xf32>
      %57 = vector.shape_cast %56 : vector<1x8x128xf32> to vector<8x128xf32>
      %58 = arith.addf %57, %44 : vector<8x128xf32>
      %c1_22 = arith.constant 1 : index
      %c0_23 = arith.constant 0 : index
      %c0_24 = arith.constant 0 : index
      %59 = vector.load %arg5[%c1_22, %c0_23, %c0_24] : memref<5x8x128xf32, #tpu.memory_space<vmem>>, vector<1x8x128xf32>
      %60 = vector.shape_cast %59 : vector<1x8x128xf32> to vector<8x128xf32>
      %61 = vector.shape_cast %58 : vector<8x128xf32> to vector<1x8x128xf32>
      tpu.vector_store %arg5[%c1_22, %c0_23, %c0_24], %61 {strides = array<i32>} : memref<5x8x128xf32, #tpu.memory_space<vmem>>, vector<1x8x128xf32>,
      %c2 = arith.constant 2 : index
      %c0_25 = arith.constant 0 : index
      %c0_26 = arith.constant 0 : index
      %62 = vector.load %arg5[%c2, %c0_25, %c0_26] : memref<5x8x128xf32, #tpu.memory_space<vmem>>, vector<1x8x128xf32>
      %63 = vector.shape_cast %62 : vector<1x8x128xf32> to vector<8x128xf32>
      %64 = arith.addf %63, %45 : vector<8x128xf32>
      %c2_27 = arith.constant 2 : index
      %c0_28 = arith.constant 0 : index
      %c0_29 = arith.constant 0 : index
      %65 = vector.load %arg5[%c2_27, %c0_28, %c0_29] : memref<5x8x128xf32, #tpu.memory_space<vmem>>, vector<1x8x128xf32>
      %66 = vector.shape_cast %65 : vector<1x8x128xf32> to vector<8x128xf32>
      %67 = vector.shape_cast %64 : vector<8x128xf32> to vector<1x8x128xf32>
      tpu.vector_store %arg5[%c2_27, %c0_28, %c0_29], %67 {strides = array<i32>} : memref<5x8x128xf32, #tpu.memory_space<vmem>>, vector<1x8x128xf32>,
      %c3 = arith.constant 3 : index
      %c0_30 = arith.constant 0 : index
      %c0_31 = arith.constant 0 : index
      %68 = vector.load %arg5[%c3, %c0_30, %c0_31] : memref<5x8x128xf32, #tpu.memory_space<vmem>>, vector<1x8x128xf32>
      %69 = vector.shape_cast %68 : vector<1x8x128xf32> to vector<8x128xf32>
      %70 = arith.addf %69, %47 : vector<8x128xf32>
      %c3_32 = arith.constant 3 : index
      %c0_33 = arith.constant 0 : index
      %c0_34 = arith.constant 0 : index
      %71 = vector.load %arg5[%c3_32, %c0_33, %c0_34] : memref<5x8x128xf32, #tpu.memory_space<vmem>>, vector<1x8x128xf32>
      %72 = vector.shape_cast %71 : vector<1x8x128xf32> to vector<8x128xf32>
      %73 = vector.shape_cast %70 : vector<8x128xf32> to vector<1x8x128xf32>
      tpu.vector_store %arg5[%c3_32, %c0_33, %c0_34], %73 {strides = array<i32>} : memref<5x8x128xf32, #tpu.memory_space<vmem>>, vector<1x8x128xf32>,
      %c4 = arith.constant 4 : index
      %c0_35 = arith.constant 0 : index
      %c0_36 = arith.constant 0 : index
      %74 = vector.load %arg5[%c4, %c0_35, %c0_36] : memref<5x8x128xf32, #tpu.memory_space<vmem>>, vector<1x8x128xf32>
      %75 = vector.shape_cast %74 : vector<1x8x128xf32> to vector<8x128xf32>
      %76 = arith.addf %75, %49 : vector<8x128xf32>
      %c4_37 = arith.constant 4 : index
      %c0_38 = arith.constant 0 : index
      %c0_39 = arith.constant 0 : index
      %77 = vector.load %arg5[%c4_37, %c0_38, %c0_39] : memref<5x8x128xf32, #tpu.memory_space<vmem>>, vector<1x8x128xf32>
      %78 = vector.shape_cast %77 : vector<1x8x128xf32> to vector<8x128xf32>
      %79 = vector.shape_cast %76 : vector<8x128xf32> to vector<1x8x128xf32>
      tpu.vector_store %arg5[%c4_37, %c0_38, %c0_39], %79 {strides = array<i32>} : memref<5x8x128xf32, #tpu.memory_space<vmem>>, vector<1x8x128xf32>,
    } else {
    }
    %c0_i32_5 = arith.constant 0 : i32
    %11 = arith.cmpi eq, %arg1, %c0_i32_5 : i32
    %12 = arith.extui %11 : i1 to i32
    %c0_i32_6 = arith.constant 0 : i32
    %13 = arith.cmpi ne, %12, %c0_i32_6 : i32
    scf.if %13 {
      %c0 = arith.constant 0 : index
      %c0_7 = arith.constant 0 : index
      %c0_8 = arith.constant 0 : index
      %14 = vector.load %arg5[%c0, %c0_7, %c0_8] : memref<5x8x128xf32, #tpu.memory_space<vmem>>, vector<1x8x128xf32>
      %15 = vector.shape_cast %14 : vector<1x8x128xf32> to vector<8x128xf32>
      %cst = arith.constant dense<0.000000e+00> : vector<128xf32>
      %16 = vector.multi_reduction <add>, %15, %cst [0] : vector<8x128xf32> to vector<128xf32>
      %17 = vector.shape_cast %16 : vector<128xf32> to vector<1x128xf32>
      %c0_9 = arith.constant 0 : index
      %c0_10 = arith.constant 0 : index
      %c0_11 = arith.constant 0 : index
      %18 = vector.load %arg4[%c0_9, %c0_10, %c0_11] : memref<1x5x128xf32, #tpu.memory_space<vmem>>, vector<1x1x128xf32>
      %19 = vector.shape_cast %18 : vector<1x1x128xf32> to vector<1x128xf32>
      %20 = vector.shape_cast %17 : vector<1x128xf32> to vector<1x1x128xf32>
      tpu.vector_store %arg4[%c0_9, %c0_10, %c0_11], %20 {strides = array<i32>} : memref<1x5x128xf32, #tpu.memory_space<vmem>>, vector<1x1x128xf32>,
      %c1 = arith.constant 1 : index
      %c0_12 = arith.constant 0 : index
      %c0_13 = arith.constant 0 : index
      %21 = vector.load %arg5[%c1, %c0_12, %c0_13] : memref<5x8x128xf32, #tpu.memory_space<vmem>>, vector<1x8x128xf32>
      %22 = vector.shape_cast %21 : vector<1x8x128xf32> to vector<8x128xf32>
      %cst_14 = arith.constant dense<0.000000e+00> : vector<128xf32>
      %23 = vector.multi_reduction <add>, %22, %cst_14 [0] : vector<8x128xf32> to vector<128xf32>
      %24 = vector.shape_cast %23 : vector<128xf32> to vector<1x128xf32>
      %c0_15 = arith.constant 0 : index
      %c1_16 = arith.constant 1 : index
      %c0_17 = arith.constant 0 : index
      %25 = vector.load %arg4[%c0_15, %c1_16, %c0_17] : memref<1x5x128xf32, #tpu.memory_space<vmem>>, vector<1x1x128xf32>
      %26 = vector.shape_cast %25 : vector<1x1x128xf32> to vector<1x128xf32>
      %27 = vector.shape_cast %24 : vector<1x128xf32> to vector<1x1x128xf32>
      tpu.vector_store %arg4[%c0_15, %c1_16, %c0_17], %27 {strides = array<i32>} : memref<1x5x128xf32, #tpu.memory_space<vmem>>, vector<1x1x128xf32>,
      %c2 = arith.constant 2 : index
      %c0_18 = arith.constant 0 : index
      %c0_19 = arith.constant 0 : index
      %28 = vector.load %arg5[%c2, %c0_18, %c0_19] : memref<5x8x128xf32, #tpu.memory_space<vmem>>, vector<1x8x128xf32>
      %29 = vector.shape_cast %28 : vector<1x8x128xf32> to vector<8x128xf32>
      %cst_20 = arith.constant dense<0.000000e+00> : vector<128xf32>
      %30 = vector.multi_reduction <add>, %29, %cst_20 [0] : vector<8x128xf32> to vector<128xf32>
      %31 = vector.shape_cast %30 : vector<128xf32> to vector<1x128xf32>
      %c0_21 = arith.constant 0 : index
      %c2_22 = arith.constant 2 : index
      %c0_23 = arith.constant 0 : index
      %32 = vector.load %arg4[%c0_21, %c2_22, %c0_23] : memref<1x5x128xf32, #tpu.memory_space<vmem>>, vector<1x1x128xf32>
      %33 = vector.shape_cast %32 : vector<1x1x128xf32> to vector<1x128xf32>
      %34 = vector.shape_cast %31 : vector<1x128xf32> to vector<1x1x128xf32>
      tpu.vector_store %arg4[%c0_21, %c2_22, %c0_23], %34 {strides = array<i32>} : memref<1x5x128xf32, #tpu.memory_space<vmem>>, vector<1x1x128xf32>,
      %c3 = arith.constant 3 : index
      %c0_24 = arith.constant 0 : index
      %c0_25 = arith.constant 0 : index
      %35 = vector.load %arg5[%c3, %c0_24, %c0_25] : memref<5x8x128xf32, #tpu.memory_space<vmem>>, vector<1x8x128xf32>
      %36 = vector.shape_cast %35 : vector<1x8x128xf32> to vector<8x128xf32>
      %cst_26 = arith.constant dense<0.000000e+00> : vector<128xf32>
      %37 = vector.multi_reduction <add>, %36, %cst_26 [0] : vector<8x128xf32> to vector<128xf32>
      %38 = vector.shape_cast %37 : vector<128xf32> to vector<1x128xf32>
      %c0_27 = arith.constant 0 : index
      %c3_28 = arith.constant 3 : index
      %c0_29 = arith.constant 0 : index
      %39 = vector.load %arg4[%c0_27, %c3_28, %c0_29] : memref<1x5x128xf32, #tpu.memory_space<vmem>>, vector<1x1x128xf32>
      %40 = vector.shape_cast %39 : vector<1x1x128xf32> to vector<1x128xf32>
      %41 = vector.shape_cast %38 : vector<1x128xf32> to vector<1x1x128xf32>
      tpu.vector_store %arg4[%c0_27, %c3_28, %c0_29], %41 {strides = array<i32>} : memref<1x5x128xf32, #tpu.memory_space<vmem>>, vector<1x1x128xf32>,
      %c4 = arith.constant 4 : index
      %c0_30 = arith.constant 0 : index
      %c0_31 = arith.constant 0 : index
      %42 = vector.load %arg5[%c4, %c0_30, %c0_31] : memref<5x8x128xf32, #tpu.memory_space<vmem>>, vector<1x8x128xf32>
      %43 = vector.shape_cast %42 : vector<1x8x128xf32> to vector<8x128xf32>
      %cst_32 = arith.constant dense<0.000000e+00> : vector<128xf32>
      %44 = vector.multi_reduction <add>, %43, %cst_32 [0] : vector<8x128xf32> to vector<128xf32>
      %45 = vector.shape_cast %44 : vector<128xf32> to vector<1x128xf32>
      %c0_33 = arith.constant 0 : index
      %c4_34 = arith.constant 4 : index
      %c0_35 = arith.constant 0 : index
      %46 = vector.load %arg4[%c0_33, %c4_34, %c0_35] : memref<1x5x128xf32, #tpu.memory_space<vmem>>, vector<1x1x128xf32>
      %47 = vector.shape_cast %46 : vector<1x1x128xf32> to vector<1x128xf32>
      %48 = vector.shape_cast %45 : vector<1x128xf32> to vector<1x1x128xf32>
      tpu.vector_store %arg4[%c0_33, %c4_34, %c0_35], %48 {strides = array<i32>} : memref<1x5x128xf32, #tpu.memory_space<vmem>>, vector<1x1x128xf32>,
    } else {
    }
    return
  }
  func.func @transform_0(%arg0: i32, %arg1: i32) -> (i32, i32) {
    %c1_i32 = arith.constant 1 : i32
    %0 = arith.muli %arg0, %c1_i32 : i32
    %1 = arith.addi %0, %arg1 : i32
    %c0_i32 = arith.constant 0 : i32
    %2 = arith.minsi %1, %c0_i32 : i32
    %c0_i32_0 = arith.constant 0 : i32
    %c0_i32_1 = arith.constant 0 : i32
    return %2, %c0_i32_0 : i32, i32
  }
  func.func @transform_1(%arg0: i32, %arg1: i32) -> (i32, i32) {
    %c1_i32 = arith.constant 1 : i32
    %0 = arith.muli %arg0, %c1_i32 : i32
    %1 = arith.addi %0, %arg1 : i32
    %c0_i32 = arith.constant 0 : i32
    %2 = arith.minsi %1, %c0_i32 : i32
    %c0_i32_0 = arith.constant 0 : i32
    %c0_i32_1 = arith.constant 0 : i32
    return %2, %c0_i32_0 : i32, i32
  }
  func.func @transform_2(%arg0: i32, %arg1: i32) -> (i32, i32, i32) {
    %c0_i32 = arith.constant 0 : i32
    %c0_i32_0 = arith.constant 0 : i32
    %c0_i32_1 = arith.constant 0 : i32
    return %arg0, %c0_i32, %c0_i32_0 : i32, i32, i32
  }
}

</mosaic_0001>

<bundles_post_ra>
// kernel: aucm_loss.1
= control target key start
LH: loop header
LB: loop body
LE: loop exit
PB: predicated region body
PF: predicated region fallthrough
CT: control target
= control target key end

     0   :  { %v115_v0 = vlaneseq  ;;  %v228_v7 = vmov 0.0   ;;  %s265_s1 = inlined_call_operand.vmem [shape: f32[8,128], index: 1, kind: input, shape index: {}]   ;;  %s266_s0 = inlined_call_operand.vmem [shape: f32[8,128], index: 0, kind: input, shape index: {}]   ;;  %s267_s2 = inlined_call_operand.vmem [shape: f32[1,5,128], index: 2, kind: output, shape index: {}]  }
   0x1   :  { %v125_v1 = vld [vmem:[%s265_s1] sm:$0xff] }
   0x2   :  { %v116_v2 = vshrl.u32 %v115_v0, 7  ;;  %v119_v3 = vand.u32 127, %v115_v0  ;;  %vm126_vm0 = vcmp.eq.f32.partialorder %v125_v1, 1.0  ;;  %v124_v6 = vld [vmem:[%s266_s0] sm:$0xff] }
   0x3   :  { %v226_v8 = vsel %vm126_vm0, 1.0, %v228_v7 }
   0x4   :  { %v117_v4 = vmul.u32 128, %v116_v2 }
   0x6   :  { %v120_v5 = vadd.s32 %v119_v3, %v117_v4 }
   0x8   :  { %vm132_vm1 = vcmp.lt.s32.totalorder %v120_v5, 300 }
   0x9   :  { %v133_v9 = vsel %vm132_vm1, %v124_v6, 0.0  ;;  %v134_v10 = vsel %vm132_vm1, %v226_v8, 0.0 }
   0xa   :  { %v166_v11 = vrot.slane %v134_v10, 4  ;;  %v175_v12 = vrot.slane %v133_v9, 4  ;;  %v135_v13 = vmul.f32 %v134_v10, %v133_v9  ;;  %v139_v14 = vmul.f32 %v133_v9, %v133_v9 }
   0xc   :  { %v167_v15 = vadd.f32 %v166_v11, %v134_v10  ;;  %v176_v16 = vadd.f32 %v175_v12, %v133_v9  ;;  %v184_v17 = vrot.slane %v135_v13, 4  ;;  %v193_v18 = vrot.slane %v139_v14, 4 }
   0xd   :  { %v141_v19 = vmul.f32 %v135_v13, %v133_v9 }
   0xe   :  { %v168_v20 = vrot.slane %v167_v15, 2  ;;  %v177_v21 = vrot.slane %v176_v16, 2  ;;  %v185_v22 = vadd.f32 %v184_v17, %v135_v13  ;;  %v194_v23 = vadd.f32 %v193_v18, %v139_v14 }
   0xf   :  { %v202_v24 = vrot.slane %v141_v19, 4 }
  0x10   :  { %v169_v25 = vadd.f32 %v168_v20, %v167_v15  ;;  %v178_v26 = vadd.f32 %v177_v21, %v176_v16  ;;  %v186_v27 = vrot.slane %v185_v22, 2  ;;  %v195_v28 = vrot.slane %v194_v23, 2 }
  0x11   :  { %v203_v29 = vadd.f32 %v202_v24, %v141_v19 }
  0x12   :  { %v170_v30 = vrot.slane %v169_v25, 1  ;;  %v179_v31 = vrot.slane %v178_v26, 1  ;;  %v187_v32 = vadd.f32 %v186_v27, %v185_v22  ;;  %v196_v33 = vadd.f32 %v195_v28, %v194_v23 }
  0x13   :  { %v204_v34 = vrot.slane %v203_v29, 2 }
  0x14   :  { %v171_v35 = vadd.f32 %v170_v30, %v169_v25  ;;  %v180_v36 = vadd.f32 %v179_v31, %v178_v26  ;;  %v188_v37 = vrot.slane %v187_v32, 1  ;;  %v197_v38 = vrot.slane %v196_v33, 1 }
  0x15   :  { %v205_v39 = vadd.f32 %v204_v34, %v203_v29 }
  0x16   :  { %172 = vst [vmem:[%s267_s2] sm:$0x1] %v171_v35  ;;  %181 = vst [vmem:[%s267_s2 + $0x1] sm:$0x1] %v180_v36  ;;  %v189_v40 = vadd.f32 %v188_v37, %v187_v32  ;;  %v198_v41 = vadd.f32 %v197_v38, %v196_v33 }
  0x17   :  { %v206_v42 = vrot.slane %v205_v39, 1 }
  0x18   :  { %190 = vst [vmem:[%s267_s2 + $0x2] sm:$0x1] %v189_v40  ;;  %199 = vst [vmem:[%s267_s2 + $0x3] sm:$0x1] %v198_v41 }
  0x19   :  { %v207_v43 = vadd.f32 %v206_v42, %v205_v39 }
  0x1b   :  { %208 = vst [vmem:[%s267_s2 + $0x4] sm:$0x1] %v207_v43 }

</bundles_post_ra>
